<compile_context>
chip_gen: v5e
topology: v5e:2x2
jax: 0.10.0
libtpu: 0.0.40
codegen_flags: <defaults>
</compile_context>

<pallas_src>
import math
import functools

import jax
import jax.numpy as jnp
from jax import lax
from jax.experimental import pallas as pl
from jax.experimental.pallas import tpu as pltpu


_LN_EPS = 1e-5


@functools.lru_cache(maxsize=1)
def _vmem_limit_bytes():
    """Chip-aware VMEM limit: ~100 MiB on 128-MiB parts, ~48 MiB on v7x."""
    try:
        cap = int(pltpu.get_tpu_info().vmem_capacity_bytes)
    except Exception:
        cap = 64 * 1024 * 1024
    return int(min(max(cap - 16 * 1024 * 1024, 32 * 1024 * 1024), 100 * 1024 * 1024))


def _seq_tile(s, cap=512):
    """Largest convenient tile that divides S (falls back to S)."""
    for t in (512, 256, 128, 64):
        if t <= cap and s % t == 0:
            return t
    # Note: for awkward S (not a multiple of 64) we fall back to a single tile;
    # padding S to a multiple of 128 in the wrapper would be better for huge S.
    return s


def _layernorm(x, gamma, beta):
    mu = jnp.mean(x, axis=-1, keepdims=True)
    var = jnp.mean((x - mu) ** 2, axis=-1, keepdims=True)
    return (x - mu) * lax.rsqrt(var + _LN_EPS) * gamma + beta


# ----------------------------------------------------------------------------
# Kernel 1: LayerNorm1 + c_attn -> q (pre-scaled by 1/sqrt(dk)), k, v   (bf16)
# ----------------------------------------------------------------------------
def ln1_qkv_kernel(x_ref, g_ref, b_ref,
                   wq_ref, bq_ref, wk_ref, bk_ref, wv_ref, bv_ref,
                   q_ref, k_ref, v_ref):
    x = x_ref[...].astype(jnp.float32)                        # (TS, D)
    nx = _layernorm(x, g_ref[...], b_ref[...])                # f32
    nxb = nx.astype(jnp.bfloat16)
    q = jnp.dot(nxb, wq_ref[...], preferred_element_type=jnp.float32) + bq_ref[...]
    k = jnp.dot(nxb, wk_ref[...], preferred_element_type=jnp.float32) + bk_ref[...]
    v = jnp.dot(nxb, wv_ref[...], preferred_element_type=jnp.float32) + bv_ref[...]
    q_ref[...] = q.astype(q_ref.dtype)
    k_ref[...] = k.astype(k_ref.dtype)
    v_ref[...] = v.astype(v_ref.dtype)


# ----------------------------------------------------------------------------
# Kernel 2: per-(batch, q-tile) attention over ALL heads
#   head split / merge happens in-VMEM (no HBM transposes)
# ----------------------------------------------------------------------------
def _attn_body(q_ref, k_ref, v_ref, mask_ref, ctx_ref, scores_ref, *, n_head, causal):
    TQ, D = q_ref.shape
    S = k_ref.shape[0]
    dk = D // n_head

    # (TQ/S, D) -> (H, TQ/S, dk): lane-split reshape + major-dim transpose (VMEM only)
    qh = jnp.transpose(q_ref[...].reshape(TQ, n_head, dk), (1, 0, 2))     # bf16
    kh = jnp.transpose(k_ref[...].reshape(S, n_head, dk), (1, 0, 2))      # bf16
    vh = jnp.transpose(v_ref[...].reshape(S, n_head, dk), (1, 0, 2))      # bf16

    # q already carries the 1/sqrt(dk) scale (folded into c_attn weights)
    s = jnp.einsum('hqd,hkd->hqk', qh, kh,
                   preferred_element_type=jnp.float32)                    # (H, TQ, S) f32

    if causal:
        q_off = pl.program_id(1) * TQ
        row = q_off + lax.broadcasted_iota(jnp.int32, (TQ, S), 0)
        col = lax.broadcasted_iota(jnp.int32, (TQ, S), 1)
        s = s + jnp.where(col > row, jnp.float32(-10000.0), jnp.float32(0.0))
    elif mask_ref is not None:
        s = s + mask_ref[...]                                  # (TQ, S) f32, bcast over H

    s = s - jnp.max(s, axis=-1, keepdims=True)                 # stable softmax (f32)
    e = jnp.exp(s)
    p = e * pl.reciprocal(jnp.sum(e, axis=-1, keepdims=True), approx=True)
    scores_ref[...] = p.astype(scores_ref.dtype)               # bf16, dropout = identity

    ctx = jnp.einsum('hqk,hkd->hqd', p.astype(jnp.bfloat16), vh,
                     preferred_element_type=jnp.float32)       # (H, TQ, dk) f32
    ctx = jnp.transpose(ctx, (1, 0, 2)).reshape(TQ, D)         # merge_heads in-VMEM
    ctx_ref[...] = ctx.astype(ctx_ref.dtype)                   # lane-dense bf16 store


def attn_kernel_nomask(q_ref, k_ref, v_ref, ctx_ref, scores_ref, *, n_head, causal):
    _attn_body(q_ref, k_ref, v_ref, None, ctx_ref, scores_ref,
               n_head=n_head, causal=causal)


def attn_kernel_masked(q_ref, k_ref, v_ref, mask_ref, ctx_ref, scores_ref, *, n_head):
    _attn_body(q_ref, k_ref, v_ref, mask_ref, ctx_ref, scores_ref,
               n_head=n_head, causal=False)


# ----------------------------------------------------------------------------
# Kernel 3: attention c_proj + residual + LN2 + MLP (gelu_new) + residual
# ----------------------------------------------------------------------------
def proj_mlp_kernel(x_ref, a_ref, w_ap_ref, b_ap_ref, g2_ref, b2_ref,
                    w_fc_ref, b_fc_ref, w_pr_ref, b_pr_ref, out_ref):
    x = x_ref[...].astype(jnp.float32)                         # (TS, D)
    a = jnp.dot(a_ref[...], w_ap_ref[...],                     # bf16 x bf16 -> f32
                preferred_element_type=jnp.float32) + b_ap_ref[...]
    x = x + a                                                  # residual (f32)

    nx = _layernorm(x, g2_ref[...], b2_ref[...])               # f32
    h = jnp.dot(nx.astype(jnp.bfloat16), w_fc_ref[...],
                preferred_element_type=jnp.float32) + b_fc_ref[...]
    g = 0.5 * h * (1.0 + jnp.tanh(math.sqrt(2.0 / math.pi)
                                  * (h + 0.044715 * (h ** 3))))    # gelu_new (f32)
    m = jnp.dot(g.astype(jnp.bfloat16), w_pr_ref[...],
                preferred_element_type=jnp.float32) + b_pr_ref[...]
    out_ref[...] = (x + m).astype(out_ref.dtype)


# ----------------------------------------------------------------------------
# One GPT2_TransformerBlock
# ----------------------------------------------------------------------------
def gpt2_block(x, add_mask, causal, p, n_head):
    B, S, D = x.shape
    F = p["w_fc"].shape[1]
    TS = _seq_tile(S)                 # tile for kernels 1 & 3
    TQ = _seq_tile(S, cap=256)        # attention q-tile (bounds f32 intermediates)

    cp = pltpu.CompilerParams(dimension_semantics=("parallel", "parallel"),
                              vmem_limit_bytes=_vmem_limit_bytes())

    # ---- 1) LN1 + c_attn -> q, k, v  (B, S, D) bf16, q pre-scaled ----
    q, k, v = pl.pallas_call(
        ln1_qkv_kernel,
        grid=(B, S // TS),
        in_specs=[
            pl.BlockSpec((None, TS, D), lambda b, s: (b, s, 0)),
            pl.BlockSpec((1, D), lambda b, s: (0, 0)),
            pl.BlockSpec((1, D), lambda b, s: (0, 0)),
            pl.BlockSpec((D, D), lambda b, s: (0, 0)),
            pl.BlockSpec((1, D), lambda b, s: (0, 0)),
            pl.BlockSpec((D, D), lambda b, s: (0, 0)),
            pl.BlockSpec((1, D), lambda b, s: (0, 0)),
            pl.BlockSpec((D, D), lambda b, s: (0, 0)),
            pl.BlockSpec((1, D), lambda b, s: (0, 0)),
        ],
        out_specs=(
            pl.BlockSpec((None, TS, D), lambda b, s: (b, s, 0)),
            pl.BlockSpec((None, TS, D), lambda b, s: (b, s, 0)),
            pl.BlockSpec((None, TS, D), lambda b, s: (b, s, 0)),
        ),
        out_shape=(
            jax.ShapeDtypeStruct((B, S, D), jnp.bfloat16),
            jax.ShapeDtypeStruct((B, S, D), jnp.bfloat16),
            jax.ShapeDtypeStruct((B, S, D), jnp.bfloat16),
        ),
        compiler_params=cp,
    )(x, p["ln1_g"], p["ln1_b"],
      p["w_q"], p["b_q"], p["w_k"], p["b_k"], p["w_v"], p["b_v"])

    # ---- 2) attention, all heads per (batch, q-tile) ----
    attn_in_specs = [
        pl.BlockSpec((None, TQ, D), lambda b, s: (b, s, 0)),   # q tile
        pl.BlockSpec((None, S, D), lambda b, s: (b, 0, 0)),    # full K
        pl.BlockSpec((None, S, D), lambda b, s: (b, 0, 0)),    # full V
    ]
    attn_args = [q, k, v]
    if (add_mask is not None) and (not causal):
        kernel = functools.partial(attn_kernel_masked, n_head=n_head)
        attn_in_specs.append(pl.BlockSpec((TQ, S), lambda b, s: (s, 0)))
        attn_args.append(add_mask)
    else:
        kernel = functools.partial(attn_kernel_nomask, n_head=n_head, causal=causal)

    ctx, scores = pl.pallas_call(
        kernel,
        grid=(B, S // TQ),
        in_specs=attn_in_specs,
        out_specs=(
            pl.BlockSpec((None, TQ, D), lambda b, s: (b, s, 0)),
            pl.BlockSpec((None, n_head, TQ, S), lambda b, s: (b, 0, s, 0)),
        ),
        out_shape=(
            jax.ShapeDtypeStruct((B, S, D), jnp.bfloat16),
            jax.ShapeDtypeStruct((B, n_head, S, S), jnp.bfloat16),
        ),
        compiler_params=cp,
    )(*attn_args)

    # ---- 3) c_proj + residual + LN2 + MLP + residual ----
    out = pl.pallas_call(
        proj_mlp_kernel,
        grid=(B, S // TS),
        in_specs=[
            pl.BlockSpec((None, TS, D), lambda b, s: (b, s, 0)),   # x (residual)
            pl.BlockSpec((None, TS, D), lambda b, s: (b, s, 0)),   # ctx (merged, bf16)
            pl.BlockSpec((D, D), lambda b, s: (0, 0)),
            pl.BlockSpec((1, D), lambda b, s: (0, 0)),
            pl.BlockSpec((1, D), lambda b, s: (0, 0)),
            pl.BlockSpec((1, D), lambda b, s: (0, 0)),
            pl.BlockSpec((D, F), lambda b, s: (0, 0)),
            pl.BlockSpec((1, F), lambda b, s: (0, 0)),
            pl.BlockSpec((F, D), lambda b, s: (0, 0)),
            pl.BlockSpec((1, D), lambda b, s: (0, 0)),
        ],
        out_specs=pl.BlockSpec((None, TS, D), lambda b, s: (b, s, 0)),
        out_shape=jax.ShapeDtypeStruct((B, S, D), x.dtype),
        compiler_params=cp,
    )(x, ctx, p["w_ap"], p["b_ap"], p["ln2_g"], p["ln2_b"],
      p["w_fc"], p["b_fc"], p["w_pr"], p["b_pr"])

    return out, scores


# ----------------------------------------------------------------------------
# GPT2Decoder forward: loop the block over layers
# ----------------------------------------------------------------------------
def gpt2_decoder(x, prepped_layers, n_head, look_ahead_mask=None, causal=False):
    """causal=True builds the standard causal mask in-kernel (no mask DMA);
    look_ahead_mask (arbitrary 0/1 mask broadcastable to (S,S)) uses the
    streamed additive-mask path.  Both None -> no masking."""
    B, S, D = x.shape
    add_mask = None
    if (look_ahead_mask is not None) and (not causal):
        m = jnp.asarray(look_ahead_mask, jnp.float32)
        if m.ndim > 2:
            m = m.reshape(m.shape[-2:])
        add_mask = (1.0 - jnp.broadcast_to(m, (S, S))) * jnp.float32(-10000.0)

    layers_attn_scores = []
    for p in prepped_layers:
        x, scores = gpt2_block(x, add_mask, causal, p, n_head)
        layers_attn_scores.append(scores)
    return x, layers_attn_scores


# ----------------------------------------------------------------------------
# Parameters: torch-style f32 init + one-time "load-time" prep
# (bf16 cast, c_attn split into Wq/Wk/Wv, 1/sqrt(dk) folded into q)
# ----------------------------------------------------------------------------
def init_params(key, num_layers, d_model, d_ff):
    layers = []
    for _ in range(num_layers):
        key, k0, k1, k2, k3 = jax.random.split(key, 5)
        layers.append(dict(
            ln1_g=jnp.ones((d_model,), jnp.float32),
            ln1_b=jnp.zeros((d_model,), jnp.float32),
            w_attn=0.02 * jax.random.normal(k0, (d_model, 3 * d_model), jnp.float32),
            b_attn=jnp.zeros((3 * d_model,), jnp.float32),
            w_ap=0.02 * jax.random.normal(k1, (d_model, d_model), jnp.float32),
            b_ap=jnp.zeros((d_model,), jnp.float32),
            ln2_g=jnp.ones((d_model,), jnp.float32),
            ln2_b=jnp.zeros((d_model,), jnp.float32),
            w_fc=0.02 * jax.random.normal(k2, (d_model, d_ff), jnp.float32),
            b_fc=jnp.zeros((d_ff,), jnp.float32),
            w_pr=0.02 * jax.random.normal(k3, (d_ff, d_model), jnp.float32),
            b_pr=jnp.zeros((d_model,), jnp.float32),
        ))
    return layers


def prepare_params(torch_layers, n_head):
    prepped = []
    for p in torch_layers:
        D = p["w_ap"].shape[0]
        F = p["w_fc"].shape[1]
        dk = D // n_head
        scale = 1.0 / math.sqrt(dk)
        w_attn = jnp.asarray(p["w_attn"], jnp.float32)
        b_attn = jnp.asarray(p["b_attn"], jnp.float32)
        prepped.append(dict(
            ln1_g=jnp.asarray(p["ln1_g"], jnp.float32).reshape(1, D),
            ln1_b=jnp.asarray(p["ln1_b"], jnp.float32).reshape(1, D),
            w_q=(w_attn[:, :D] * scale).astype(jnp.bfloat16),
            b_q=(b_attn[:D] * scale).astype(jnp.float32).reshape(1, D),
            w_k=w_attn[:, D:2 * D].astype(jnp.bfloat16),
            b_k=b_attn[D:2 * D].astype(jnp.float32).reshape(1, D),
            w_v=w_attn[:, 2 * D:].astype(jnp.bfloat16),
            b_v=b_attn[2 * D:].astype(jnp.float32).reshape(1, D),
            w_ap=jnp.asarray(p["w_ap"], jnp.bfloat16),
            b_ap=jnp.asarray(p["b_ap"], jnp.float32).reshape(1, D),
            ln2_g=jnp.asarray(p["ln2_g"], jnp.float32).reshape(1, D),
            ln2_b=jnp.asarray(p["ln2_b"], jnp.float32).reshape(1, D),
            w_fc=jnp.asarray(p["w_fc"], jnp.bfloat16),
            b_fc=jnp.asarray(p["b_fc"], jnp.float32).reshape(1, F),
            w_pr=jnp.asarray(p["w_pr"], jnp.bfloat16),
            b_pr=jnp.asarray(p["b_pr"], jnp.float32).reshape(1, D),
        ))
    return prepped


# ----------------------------------------------------------------------------
# Pure-JAX f32 reference of the PyTorch module (for correctness check)
# ----------------------------------------------------------------------------
def _gelu_new_ref(x):
    return 0.5 * x * (1.0 + jnp.tanh(math.sqrt(2.0 / math.pi)
                                     * (x + 0.044715 * jnp.power(x, 3.0))))


def _ln_ref(x, g, b):
    mu = jnp.mean(x, axis=-1, keepdims=True)
    var = jnp.mean((x - mu) ** 2, axis=-1, keepdims=True)
    return (x - mu) * lax.rsqrt(var + _LN_EPS) * g + b


def reference_decoder(x, torch_layers, n_head, look_ahead_mask=None):
    B, S, D = x.shape
    dk = D // n_head
    scores_all = []
    for p in torch_layers:
        nx = _ln_ref(x, p["ln1_g"], p["ln1_b"])
        qkv = nx @ p["w_attn"] + p["b_attn"]
        q, k, v = jnp.split(qkv, 3, axis=-1)

        def sh(t):
            return jnp.transpose(t.reshape(B, S, n_head, dk), (0, 2, 1, 3))

        q, k, v = sh(q), sh(k), sh(v)
        s = jnp.einsum('bhqd,bhkd->bhqk', q, k) / math.sqrt(dk)
        if look_ahead_mask is not None:
            s = s + (1.0 - look_ahead_mask) * -10000.0
        p_attn = jax.nn.softmax(s, axis=-1)
        ctx = jnp.einsum('bhqk,bhkd->bhqd', p_attn, v)
        ctx = jnp.transpose(ctx, (0, 2, 1, 3)).reshape(B, S, D)
        x = x + (ctx @ p["w_ap"] + p["b_ap"])
        nx2 = _ln_ref(x, p["ln2_g"], p["ln2_b"])
        h = nx2 @ p["w_fc"] + p["b_fc"]
        x = x + (_gelu_new_ref(h) @ p["w_pr"] + p["b_pr"])
        scores_all.append(p_attn)
    return x, scores_all


if __name__ == "__main__":
    num_layers = 2
    d_model = 32
    num_heads = 4
    d_ff = 4 * d_model            # dim_feedforward defaults to 4*d_model
    B, S = 2, 8

    key = jax.random.PRNGKey(0)
    key, kx, kp = jax.random.split(key, 3)
    x = jax.random.normal(kx, (B, S, d_model), jnp.float32)
    torch_params = init_params(kp, num_layers, d_model, d_ff)
    params = prepare_params(torch_params, num_heads)   # one-time load-time prep

    # ---- path 1: no mask ----
    out, scores = gpt2_decoder(x, params, num_heads, look_ahead_mask=None)
    out = jax.block_until_ready(out)
    scores = [jax.block_until_ready(s) for s in scores]
    assert out.shape == (B, S, d_model)
    assert len(scores) == num_layers
    assert scores[0].shape == (B, num_heads, S, S)
    row_sums = jnp.sum(scores[0].astype(jnp.float32), axis=-1)
    assert bool(jnp.all(jnp.abs(row_sums - 1.0) < 2e-2))

    ref_out, ref_scores = reference_decoder(x, torch_params, num_heads, None)
    assert float(jnp.max(jnp.abs(out - ref_out))) < 5e-2
    assert float(jnp.max(jnp.abs(scores[0].astype(jnp.float32) - ref_scores[0]))) < 5e-2

    # ---- path 2: causal mask generated in-kernel (iota, no mask DMA) ----
    out_c, scores_c = gpt2_decoder(x, params, num_heads, causal=True)
    out_c = jax.block_until_ready(out_c)
    sc0 = jax.block_until_ready(scores_c[0]).astype(jnp.float32)
    assert float(jnp.max(jnp.triu(sc0[0, 0], k=1))) < 1e-3     # upper triangle ~0

    causal_mat = jnp.tril(jnp.ones((S, S), jnp.float32))
    ref_out_c, _ = reference_decoder(x, torch_params, num_heads, causal_mat)
    assert float(jnp.max(jnp.abs(out_c - ref_out_c))) < 5e-2

    # ---- path 3: arbitrary streamed additive mask (same tril matrix) ----
    out_m, _ = gpt2_decoder(x, params, num_heads, look_ahead_mask=causal_mat)
    out_m = jax.block_until_ready(out_m)
    assert float(jnp.max(jnp.abs(out_m - out_c))) < 1e-3       # must match causal path

    print("KERNEL_OK")
</pallas_src>

<mosaic_0001>
module attributes {stable_mosaic.version = 11 : i64} {
  func.func @ln1_qkv_kernel(%arg0: i32, %arg1: i32, %arg2: memref<1x8x32xf32, #tpu.memory_space<vmem>>, %arg3: memref<1x32xf32, #tpu.memory_space<vmem>>, %arg4: memref<1x32xf32, #tpu.memory_space<vmem>>, %arg5: memref<32x32xbf16, #tpu.memory_space<vmem>>, %arg6: memref<1x32xf32, #tpu.memory_space<vmem>>, %arg7: memref<32x32xbf16, #tpu.memory_space<vmem>>, %arg8: memref<1x32xf32, #tpu.memory_space<vmem>>, %arg9: memref<32x32xbf16, #tpu.memory_space<vmem>>, %arg10: memref<1x32xf32, #tpu.memory_space<vmem>>, %arg11: memref<1x8x32xbf16, #tpu.memory_space<vmem>>, %arg12: memref<1x8x32xbf16, #tpu.memory_space<vmem>>, %arg13: memref<1x8x32xbf16, #tpu.memory_space<vmem>>) attributes {dimension_semantics = [#tpu.dimension_semantics<parallel>, #tpu.dimension_semantics<parallel>], iteration_bounds = array<i64: 2, 1>, scalar_prefetch = 0 : i64, scratch_operands = 0 : i64, tpu.core_type = #tpu.core_type<tc>, window_params = [{transform_indices = @transform_0, window_bounds = array<i64: 1, 8, 32>}, {pipeline_mode = #tpu.pipeline_mode<synchronous>, transform_indices = @transform_1, window_bounds = array<i64: 1, 32>}, {pipeline_mode = #tpu.pipeline_mode<synchronous>, transform_indices = @transform_2, window_bounds = array<i64: 1, 32>}, {pipeline_mode = #tpu.pipeline_mode<synchronous>, transform_indices = @transform_3, window_bounds = array<i64: 32, 32>}, {pipeline_mode = #tpu.pipeline_mode<synchronous>, transform_indices = @transform_4, window_bounds = array<i64: 1, 32>}, {pipeline_mode = #tpu.pipeline_mode<synchronous>, transform_indices = @transform_5, window_bounds = array<i64: 32, 32>}, {pipeline_mode = #tpu.pipeline_mode<synchronous>, transform_indices = @transform_6, window_bounds = array<i64: 1, 32>}, {pipeline_mode = #tpu.pipeline_mode<synchronous>, transform_indices = @transform_7, window_bounds = array<i64: 32, 32>}, {pipeline_mode = #tpu.pipeline_mode<synchronous>, transform_indices = @transform_8, window_bounds = array<i64: 1, 32>}, {transform_indices = @transform_9, window_bounds = array<i64: 1, 8, 32>}, {transform_indices = @transform_10, window_bounds = array<i64: 1, 8, 32>}, {transform_indices = @transform_11, window_bounds = array<i64: 1, 8, 32>}]} {
    %c0 = arith.constant 0 : index
    %c0_0 = arith.constant 0 : index
    %c0_1 = arith.constant 0 : index
    %0 = vector.load %arg2[%c0, %c0_0, %c0_1] : memref<1x8x32xf32, #tpu.memory_space<vmem>>, vector<1x8x32xf32>
    %1 = vector.shape_cast %0 : vector<1x8x32xf32> to vector<8x32xf32>
    %c0_2 = arith.constant 0 : index
    %c0_3 = arith.constant 0 : index
    %2 = vector.load %arg3[%c0_2, %c0_3] : memref<1x32xf32, #tpu.memory_space<vmem>>, vector<1x32xf32>
    %c0_4 = arith.constant 0 : index
    %c0_5 = arith.constant 0 : index
    %3 = vector.load %arg4[%c0_4, %c0_5] : memref<1x32xf32, #tpu.memory_space<vmem>>, vector<1x32xf32>
    %cst = arith.constant dense<0.000000e+00> : vector<8xf32>
    %4 = vector.multi_reduction <add>, %1, %cst [1] : vector<8x32xf32> to vector<8xf32>
    %5 = vector.shape_cast %4 : vector<8xf32> to vector<8x1xf32>
    %cst_6 = arith.constant 3.200000e+01 : f32
    %6 = vector.broadcast %cst_6 : f32 to vector<8x1xf32>
    %7 = arith.divf %5, %6 : vector<8x1xf32>
    %8 = vector.broadcast %7 : vector<8x1xf32> to vector<8x32xf32>
    %9 = arith.subf %1, %8 : vector<8x32xf32>
    %10 = arith.mulf %9, %9 : vector<8x32xf32>
    %cst_7 = arith.constant dense<0.000000e+00> : vector<8xf32>
    %11 = vector.multi_reduction <add>, %10, %cst_7 [1] : vector<8x32xf32> to vector<8xf32>
    %12 = vector.shape_cast %11 : vector<8xf32> to vector<8x1xf32>
    %cst_8 = arith.constant 3.200000e+01 : f32
    %13 = vector.broadcast %cst_8 : f32 to vector<8x1xf32>
    %14 = arith.divf %12, %13 : vector<8x1xf32>
    %15 = vector.broadcast %7 : vector<8x1xf32> to vector<8x32xf32>
    %16 = arith.subf %1, %15 : vector<8x32xf32>
    %cst_9 = arith.constant 9.99999974E-6 : f32
    %17 = vector.broadcast %cst_9 : f32 to vector<8x1xf32>
    %18 = arith.addf %14, %17 : vector<8x1xf32>
    %19 = math.rsqrt %18 : vector<8x1xf32>
    %20 = vector.broadcast %19 : vector<8x1xf32> to vector<8x32xf32>
    %21 = arith.mulf %16, %20 : vector<8x32xf32>
    %22 = vector.broadcast %2 : vector<1x32xf32> to vector<8x32xf32>
    %23 = arith.mulf %21, %22 : vector<8x32xf32>
    %24 = vector.broadcast %3 : vector<1x32xf32> to vector<8x32xf32>
    %25 = arith.addf %23, %24 : vector<8x32xf32>
    %26 = arith.truncf %25 : vector<8x32xf32> to vector<8x32xbf16>
    %c0_10 = arith.constant 0 : index
    %c0_11 = arith.constant 0 : index
    %27 = vector.load %arg5[%c0_10, %c0_11] : memref<32x32xbf16, #tpu.memory_space<vmem>>, vector<32x32xbf16>
    %cst_12 = arith.constant dense<0.000000e+00> : vector<8x32xf32>
    %28 = tpu.matmul %26, %27, %cst_12 {dimension_numbers = #tpu.dot_dimension_numbers<[1], [0], [0], [1], [0, 0, 1, 1], [], []>} : vector<8x32xbf16>, vector<32x32xbf16>, vector<8x32xf32> -> vector<8x32xf32>
    %c0_13 = arith.constant 0 : index
    %c0_14 = arith.constant 0 : index
    %29 = vector.load %arg6[%c0_13, %c0_14] : memref<1x32xf32, #tpu.memory_space<vmem>>, vector<1x32xf32>
    %30 = vector.broadcast %29 : vector<1x32xf32> to vector<8x32xf32>
    %31 = arith.addf %28, %30 : vector<8x32xf32>
    %c0_15 = arith.constant 0 : index
    %c0_16 = arith.constant 0 : index
    %32 = vector.load %arg7[%c0_15, %c0_16] : memref<32x32xbf16, #tpu.memory_space<vmem>>, vector<32x32xbf16>
    %cst_17 = arith.constant dense<0.000000e+00> : vector<8x32xf32>
    %33 = tpu.matmul %26, %32, %cst_17 {dimension_numbers = #tpu.dot_dimension_numbers<[1], [0], [0], [1], [0, 0, 1, 1], [], []>} : vector<8x32xbf16>, vector<32x32xbf16>, vector<8x32xf32> -> vector<8x32xf32>
    %c0_18 = arith.constant 0 : index
    %c0_19 = arith.constant 0 : index
    %34 = vector.load %arg8[%c0_18, %c0_19] : memref<1x32xf32, #tpu.memory_space<vmem>>, vector<1x32xf32>
    %35 = vector.broadcast %34 : vector<1x32xf32> to vector<8x32xf32>
    %36 = arith.addf %33, %35 : vector<8x32xf32>
    %c0_20 = arith.constant 0 : index
    %c0_21 = arith.constant 0 : index
    %37 = vector.load %arg9[%c0_20, %c0_21] : memref<32x32xbf16, #tpu.memory_space<vmem>>, vector<32x32xbf16>
    %cst_22 = arith.constant dense<0.000000e+00> : vector<8x32xf32>
    %38 = tpu.matmul %26, %37, %cst_22 {dimension_numbers = #tpu.dot_dimension_numbers<[1], [0], [0], [1], [0, 0, 1, 1], [], []>} : vector<8x32xbf16>, vector<32x32xbf16>, vector<8x32xf32> -> vector<8x32xf32>
    %c0_23 = arith.constant 0 : index
    %c0_24 = arith.constant 0 : index
    %39 = vector.load %arg10[%c0_23, %c0_24] : memref<1x32xf32, #tpu.memory_space<vmem>>, vector<1x32xf32>
    %40 = vector.broadcast %39 : vector<1x32xf32> to vector<8x32xf32>
    %41 = arith.addf %38, %40 : vector<8x32xf32>
    %42 = arith.truncf %31 : vector<8x32xf32> to vector<8x32xbf16>
    %c0_25 = arith.constant 0 : index
    %c0_26 = arith.constant 0 : index
    %c0_27 = arith.constant 0 : index
    %43 = vector.load %arg11[%c0_25, %c0_26, %c0_27] : memref<1x8x32xbf16, #tpu.memory_space<vmem>>, vector<1x8x32xbf16>
    %44 = vector.shape_cast %43 : vector<1x8x32xbf16> to vector<8x32xbf16>
    %45 = vector.shape_cast %42 : vector<8x32xbf16> to vector<1x8x32xbf16>
    tpu.vector_store %arg11[%c0_25, %c0_26, %c0_27], %45 {strides = array<i32>} : memref<1x8x32xbf16, #tpu.memory_space<vmem>>, vector<1x8x32xbf16>,
    %46 = arith.truncf %36 : vector<8x32xf32> to vector<8x32xbf16>
    %c0_28 = arith.constant 0 : index
    %c0_29 = arith.constant 0 : index
    %c0_30 = arith.constant 0 : index
    %47 = vector.load %arg12[%c0_28, %c0_29, %c0_30] : memref<1x8x32xbf16, #tpu.memory_space<vmem>>, vector<1x8x32xbf16>
    %48 = vector.shape_cast %47 : vector<1x8x32xbf16> to vector<8x32xbf16>
    %49 = vector.shape_cast %46 : vector<8x32xbf16> to vector<1x8x32xbf16>
    tpu.vector_store %arg12[%c0_28, %c0_29, %c0_30], %49 {strides = array<i32>} : memref<1x8x32xbf16, #tpu.memory_space<vmem>>, vector<1x8x32xbf16>,
    %50 = arith.truncf %41 : vector<8x32xf32> to vector<8x32xbf16>
    %c0_31 = arith.constant 0 : index
    %c0_32 = arith.constant 0 : index
    %c0_33 = arith.constant 0 : index
    %51 = vector.load %arg13[%c0_31, %c0_32, %c0_33] : memref<1x8x32xbf16, #tpu.memory_space<vmem>>, vector<1x8x32xbf16>
    %52 = vector.shape_cast %51 : vector<1x8x32xbf16> to vector<8x32xbf16>
    %53 = vector.shape_cast %50 : vector<8x32xbf16> to vector<1x8x32xbf16>
    tpu.vector_store %arg13[%c0_31, %c0_32, %c0_33], %53 {strides = array<i32>} : memref<1x8x32xbf16, #tpu.memory_space<vmem>>, vector<1x8x32xbf16>,
    return
  }
  func.func @transform_0(%arg0: i32, %arg1: i32) -> (i32, i32, i32) {
    %c0_i32 = arith.constant 0 : i32
    %c0_i32_0 = arith.constant 0 : i32
    return %arg0, %arg1, %c0_i32 : i32, i32, i32
  }
  func.func @transform_1(%arg0: i32, %arg1: i32) -> (i32, i32) {
    %c0_i32 = arith.constant 0 : i32
    %c0_i32_0 = arith.constant 0 : i32
    %c0_i32_1 = arith.constant 0 : i32
    return %c0_i32, %c0_i32_0 : i32, i32
  }
  func.func @transform_2(%arg0: i32, %arg1: i32) -> (i32, i32) {
    %c0_i32 = arith.constant 0 : i32
    %c0_i32_0 = arith.constant 0 : i32
    %c0_i32_1 = arith.constant 0 : i32
    return %c0_i32, %c0_i32_0 : i32, i32
  }
  func.func @transform_3(%arg0: i32, %arg1: i32) -> (i32, i32) {
    %c0_i32 = arith.constant 0 : i32
    %c0_i32_0 = arith.constant 0 : i32
    %c0_i32_1 = arith.constant 0 : i32
    return %c0_i32, %c0_i32_0 : i32, i32
  }
  func.func @transform_4(%arg0: i32, %arg1: i32) -> (i32, i32) {
    %c0_i32 = arith.constant 0 : i32
    %c0_i32_0 = arith.constant 0 : i32
    %c0_i32_1 = arith.constant 0 : i32
    return %c0_i32, %c0_i32_0 : i32, i32
  }
  func.func @transform_5(%arg0: i32, %arg1: i32) -> (i32, i32) {
    %c0_i32 = arith.constant 0 : i32
    %c0_i32_0 = arith.constant 0 : i32
    %c0_i32_1 = arith.constant 0 : i32
    return %c0_i32, %c0_i32_0 : i32, i32
  }
  func.func @transform_6(%arg0: i32, %arg1: i32) -> (i32, i32) {
    %c0_i32 = arith.constant 0 : i32
    %c0_i32_0 = arith.constant 0 : i32
    %c0_i32_1 = arith.constant 0 : i32
    return %c0_i32, %c0_i32_0 : i32, i32
  }
  func.func @transform_7(%arg0: i32, %arg1: i32) -> (i32, i32) {
    %c0_i32 = arith.constant 0 : i32
    %c0_i32_0 = arith.constant 0 : i32
    %c0_i32_1 = arith.constant 0 : i32
    return %c0_i32, %c0_i32_0 : i32, i32
  }
  func.func @transform_8(%arg0: i32, %arg1: i32) -> (i32, i32) {
    %c0_i32 = arith.constant 0 : i32
    %c0_i32_0 = arith.constant 0 : i32
    %c0_i32_1 = arith.constant 0 : i32
    return %c0_i32, %c0_i32_0 : i32, i32
  }
  func.func @transform_9(%arg0: i32, %arg1: i32) -> (i32, i32, i32) {
    %c0_i32 = arith.constant 0 : i32
    %c0_i32_0 = arith.constant 0 : i32
    return %arg0, %arg1, %c0_i32 : i32, i32, i32
  }
  func.func @transform_10(%arg0: i32, %arg1: i32) -> (i32, i32, i32) {
    %c0_i32 = arith.constant 0 : i32
    %c0_i32_0 = arith.constant 0 : i32
    return %arg0, %arg1, %c0_i32 : i32, i32, i32
  }
  func.func @transform_11(%arg0: i32, %arg1: i32) -> (i32, i32, i32) {
    %c0_i32 = arith.constant 0 : i32
    %c0_i32_0 = arith.constant 0 : i32
    return %arg0, %arg1, %c0_i32 : i32, i32, i32
  }
}

</mosaic_0001>

<bundles_post_ra>
// kernel: tpu_custom_call.1
= control target key start
LH: loop header
LB: loop body
LE: loop exit
PB: predicated region body
PF: predicated region fallthrough
CT: control target
= control target key end

     0   :  { %s1710_s0 = inlined_call_operand.hbm [shape: f32[2,8,32], index: 0, kind: input, shape index: {}]   ;;  %s1711_s1 = inlined_call_operand.hbm [shape: f32[1,32], index: 1, kind: input, shape index: {}]   ;;  %s1712_s2 = inlined_call_operand.vmem [shape: f32[1,32], index: 2, kind: input, shape index: {}]   ;;  %s1713_s3 = inlined_call_operand.hbm [shape: bf16[32,32], index: 3, kind: input, shape index: {}]   ;;  %s1714_s4 = inlined_call_operand.vmem [shape: f32[1,32], index: 4, kind: input, shape index: {}]   ;;  %s1715_s5 = inlined_call_operand.hbm [shape: bf16[32,32], index: 5, kind: input, shape index: {}]   ;;  %s1716_s6 = inlined_call_operand.vmem [shape: f32[1,32], index: 6, kind: input, shape index: {}]   ;;  %s1717_s7 = inlined_call_operand.hbm [shape: bf16[32,32], index: 7, kind: input, shape index: {}]   ;;  %s1718_s8 = inlined_call_operand.vmem [shape: f32[1,32], index: 8, kind: input, shape index: {}]   ;;  %s1719_s9 = inlined_call_operand.hbm [shape: bf16[2,8,32], index: 9, kind: output, shape index: {0}]   ;;  %s1720_s10 = inlined_call_operand.hbm [shape: bf16[2,8,32], index: 10, kind: output, shape index: {1}]   ;;  %s1721_s11 = inlined_call_operand.hbm [shape: bf16[2,8,32], index: 11, kind: output, shape index: {2}]  }
   0x1   :  { %1730 = sst [smem:[#allocation24_spill]] %s1710_s0 }
   0x2   :  { %1731 = sst [smem:[#allocation25_spill]] %s1711_s1 }
   0x3   :  { %1732 = sst [smem:[#allocation26_spill]] %s1712_s2 }
   0x4   :  { %1733 = sst [smem:[#allocation27_spill]] %s1713_s3 }
   0x5   :  { %1734 = sst [smem:[#allocation28_spill]] %s1715_s5 }
   0x6   :  { %1735 = sst [smem:[#allocation29_spill]] %s1717_s7 }
   0x7   :  { %17 = vsyncpa [#allocation3], 0 }
   0x8   :  { %19 = vsyncpa [#allocation3 + $0x1], 0 }
   0x9   :  { %20 = vsyncpa [#allocation6], 0 }
   0xa   :  { %21 = vsyncpa [#allocation9], 0 }
   0xb   :  { %22 = vsyncpa [#allocation4], 0 }
   0xc   :  { %24 = vsyncpa [#allocation4 + $0x1], 0 }
   0xd   :  { %25 = vsyncpa [#allocation13], 0 }
   0xe   :  { %27 = vsyncpa [#allocation13 + $0x1], 0  ;;  %s1453_s17 = smov 0   ;;  %s1455_s18 = smov 0  }
   0xf   :  { %s1457_s19 = smov 0   ;;  %s1459_s20 = smov 0  }
  0x10   :  { %s1461_s21 = smov 0   ;;  %s1463_s22 = smov 0  }
  0x11 LB: > { %1736 = sst [smem:[#allocation20_spill]] %s1380_s21  ;;  %s1484_s23 = sadd.s32 4294967295, %s1384_s22   ;;  %s1384_s22 = sphi %s1463_s22, %s33_s22   ;;  %s1380_s21 = sphi %s1461_s21, %s1760_s21   ;;  %s1376_s20 = sphi %s1459_s20, %s1759_s20   ;;  %s1372_s19 = sphi %s1457_s19, %s1763_s19   ;;  %s1368_s18 = sphi %s1455_s18, %s1762_s18   ;;  %s1364_s17 = sphi %s1453_s17, %s1761_s17  }
  0x12   : > { %p901_p0 = scmp.ge.s32.totalorder %s1384_s22, 1  ;;  %p68_p1 = scmp.eq.s32.totalorder %s1484_s23, 0 }
  0x13   : > { %p330_p2 = scmp.lt.s32.totalorder %s1384_s22, 3  ;;  %s1737_s1 = sld [smem:[#allocation25_spill]] }
  0x14   : > { %p906_p4 = scmp.ge.s32.totalorder %s1384_s22, 2  ;;  %s1386_s28 = smov [#allocation5]  }
  0x15   : > { %p1492_p3 = pnand %p901_p0, %p330_p2  ;;  %s344_s29 = sshll.u32 %s1386_s28, 4  ;;  %s345_s29 = int_to_ptr.vmem [resolvable:$true] %s344_s29 }
  0x16   : > { %s1740_s5 = sld [smem:[#allocation28_spill]]  ;;  %s1387_s15 = smov [#allocation8]  }
  0x17   : > { %p983_p5 = pneg %p1492_p3  ;;  %s375_s16 = sshll.u32 %s1387_s15, 4  ;;  %s376_s16 = int_to_ptr.vmem [resolvable:$true] %s375_s16 }
  0x18   : > { %s1741_s3 = sld [smem:[#allocation27_spill]]  ;;  %s1389_s12 = smov 4  }
  0x19   : > { %s342_s26 = sshll.u32 %s1737_s1, 4  ;;  %p1501_p6 = pnand %p983_p5, %p68_p1  ;;  %s343_s26 = int_to_ptr.hbm [resolvable:$true] %s342_s26 }
  0x1a   : > { %s1388_s1 = smov 64   ;;  %s1742_s7 = sld [smem:[#allocation29_spill]] }
  0x1b   : > { %986 = dma.hbm_to_vmem [thread:$0]  (!%p1501_p6), %s343_s26, 16, %s345_s29, [#allocation6]  }
  0x1c   : > { %s373_s14 = sshll.u32 %s1740_s5, 4  ;;  %s1390_s15 = smov [#allocation7]   ;;  %s374_s14 = int_to_ptr.hbm [resolvable:$true] %s373_s14 }
  0x1d   : > { %992 = dma.hbm_to_vmem [thread:$0]  (!%p1501_p6), %s374_s14, 256, %s376_s16, [#allocation9], %s1388_s1, %s1388_s1, %s1389_s12  }
  0x1e   : > { %s356_s28 = sshll.u32 %s1741_s3, 4  ;;  %s358_s24 = sshll.u32 %s1390_s15, 4  ;;  %s357_s28 = int_to_ptr.hbm [resolvable:$true] %s356_s28  ;;  %s359_s24 = int_to_ptr.vmem [resolvable:$true] %s358_s24 }
  0x1f   : > { %989 = dma.hbm_to_vmem [thread:$0]  (!%p1501_p6), %s357_s28, 256, %s359_s24, [#allocation6], %s1388_s1, %s1388_s1, %s1389_s12  }
  0x20   : > { %s390_s29 = sshll.u32 %s1742_s7, 4  ;;  %s1391_s25 = smov [#allocation10]   ;;  %s391_s29 = int_to_ptr.hbm [resolvable:$true] %s390_s29 }
  0x21   : > { %s392_s3 = sshll.u32 %s1391_s25, 4  ;;  %s45_s14 = sadd.s32 1, %s1380_s21  ;;  %s393_s3 = int_to_ptr.vmem [resolvable:$true] %s392_s3 }
  0x22   : > { %995 = dma.hbm_to_vmem [thread:$0]  (!%p1501_p6), %s391_s29, 256, %s393_s3, [#allocation9], %s1388_s1, %s1388_s1, %s1389_s12  }
  0x23   : > { %s1723_s16 = sadd.s32 4294967294, %s1384_s22   ;;  %p47_p7 = scmp.ge.s32.totalorder %s45_s14, 2 }
  0x24   : > { %s54_s13 = sadd.s32 1, %s1372_s19  ;;  %p61_p8 = scmp.ne.s32.totalorder %s1372_s19, %s1368_s18 }
  0x25   : > { %s1765_s14 = smov (%p47_p7, %s45_s14), 0  ;;  %p62_p9 = scmp.eq.s32.totalorder %s1384_s22, 0 }
  0x26   : > { %1743 = sst [smem:[#allocation21_spill]] %s1765_s14  ;;  %p67_p10 = scmp.ne.s32.totalorder %s1368_s18, %s1364_s17 }
  0x27   : > { %s49_s28 = ssub.s32 %s1380_s21, %s1765_s14  ;;  %p261_p11 = scmp.eq.s32.totalorder %s1484_s23, 1 }
  0x28   : > { %p52_p12 = scmp.eq.s32.totalorder %s49_s28, 0  ;;  %p1537_p13 = por %p68_p1, %p67_p10 }
  0x29   : > { %p1541_p0 = por %p261_p11, %p61_p8  ;;  %p267_p2 = scmp.eq.s32.totalorder %s1723_s16, 1 }
  0x2a   : > { %s1548_s3 = scalar_select %p52_p12, %s1372_s19, %s54_s13  }
  0x2b   : > { %p63_p5 = por %p62_p9, %p61_p8  ;;  %p1550_p6 = por %p267_p2, %p67_p10 }
  0x2c   : > { %s409_s26 = sand.u32 1, %s1372_s19   ;;  %s908_s29 = sshll.u32 %s1380_s21, 3 }
  0x2d   : > { %p1014_p7 = scmp.lt.s32.totalorder %s1384_s22, 2  ;;  %s907_s15 = sshll.u32 %s409_s26, 3 }
  0x2e   : > { %s1747_s0 = sld [smem:[#allocation24_spill]]  ;;  %s413_s7 = scalar_lea.vmem [#allocation2], %s907_s15 }
  0x2f   : > { %s422_s14 = sshll.u32 %s413_s7, 4  ;;  %p997_p11 = pnand %p1014_p7, %p63_p5  ;;  %s423_s14 = int_to_ptr.vmem [resolvable:$true] %s422_s14 }
  0x30   : > { %s410_s13 = scalar_lea.sflag [#allocation3], %s409_s26 }
  0x32   : > { %431 = sbr.rel (%p1492_p3) target bundleno = 501 (0x1f5), region = 56 }
  0x34   : > { %s418_s28 = scalar_lea.hbm %s1747_s0, %s908_s29 }
  0x35   : > { %s420_s5 = sshll.u32 %s418_s28, 4  ;;  %s421_s5 = int_to_ptr.hbm [resolvable:$true] %s420_s5 }
  0x36   : > { %999 = dma.hbm_to_vmem [thread:$0]  (!%p997_p11), %s421_s5, 128, %s423_s14, %s410_s13  }
  0x37   : > { %s1563_s16 = sand.u32 1, %s1368_s18  }
  0x38   : > { %s910_s21 = sshll.u32 %s1563_s16, 3  ;;  %s434_s24 = scalar_lea.sflag [#allocation3], %s1563_s16 }
  0x39   : > { %s437_s29 = scalar_lea.vmem [#allocation2], %s910_s21 }
  0x3a   : > { %1343 = dma.done.wait (%p1537_p13), %s434_s24, 128  }
  0x3b   : > { %1345 = vsyncadd (%p1537_p13), %s434_s24, 4294967168 }
  0x3c   : > { %1347 = dma.done.wait (%p68_p1), [#allocation6], 272  }
  0x3d   : > { %1349 = vsyncadd (%p68_p1), [#allocation6], 4294967024 }
  0x3e   : > { %1351 = dma.done.wait (%p68_p1), [#allocation9], 512  }
  0x3f   : > { %1353 = vsyncadd (%p68_p1), [#allocation9], 4294966784  ;;  %vm511_vm0 = vcmask 261120   ;;  %v508_v0 = vld [vmem:[%s437_s29] sm:$0xff]  ;;  %v1392_v2 = vmov 32.0   ;;  %v953_v17 = vld [vmem:[#allocation7] sm:$0xff] }
  0x40   : > { %v512_v1 = vsel %vm511_vm0, %v508_v0, 0.0  ;;  %1080 = vrcp.f32 %v1392_v2  ;;  %v954_v14 = vld [vmem:[#allocation7 + $0x8] sm:$0xff]  ;;  %v956_v15 = vld [vmem:[#allocation8 + $0x8] sm:$0xff]  ;;  %v955_v18 = vld [vmem:[#allocation8] sm:$0xff]  ;;  %s1748_s2 = sld [smem:[#allocation26_spill]]  ;;  %s1588_s21 = sshll.u32 %s1563_s16, 2 }
  0x41   : > { %513 = vadd.xlane.f32.xlu0 %v512_v1  ;;  %v958_v16 = vld [vmem:[#allocation10 + $0x8] sm:$0xff]  ;;  %579 = vmatpush.bf16.msra.mxu0 %v954_v14  ;;  %v957_v19 = vld [vmem:[#allocation10] sm:$0xff]  ;;  %v1075_v29 = vld [vmem:[#allocation5] ss:$0 sm:$0xff]  ;;  %s948_s27 = sshll.u32 %s1376_s20, 2  ;;  %s664_s14 = sand.u32 1, %s1484_s23  }
  0x42   : > { %612 = vmatpush.bf16.msra.mxu1 %v956_v15  ;;  %645 = vmatpush.bf16.msra.mxu2 %v958_v16  ;;  %v1077_v36 = vld [vmem:[%s1714_s4] ss:$0 sm:$0xff]  ;;  %s696_s24 = scalar_lea.hbm %s1720_s10, %s948_s27  ;;  %s499_s29 = scalar_lea.vmem [#allocation12], %s1588_s21  ;;  %vm653_vm5 = vcmask 257024  }
  0x43   : > { %v1078_v37 = vld [vmem:[%s1716_s6] ss:$0 sm:$0xff]  ;;  %s1602_s5 = sshll.u32 %s499_s29, 4  ;;  %s681_s20 = scalar_lea.hbm %s1719_s9, %s948_s27  ;;  %s699_s5 = int_to_ptr.vmem [resolvable:$true] %s1602_s5 }
  0x44   : > { %s1608_s23 = sshll.u32 %s696_s24, 4  ;;  %s1725_s30 = scalar_lea.vmem [#allocation11], %s1588_s21  ;;  %v1079_v44 = vld [vmem:[%s1718_s8] ss:$0 sm:$0xff]  ;;  %s701_s23 = int_to_ptr.hbm [resolvable:$true] %s1608_s23 }
  0x45   : > { %580 = vmatpush.bf16.msra.mxu0 %v953_v17  ;;  %s1613_s26 = sshll.u32 %s1725_s30, 4  ;;  %s1615_s15 = sshll.u32 %s681_s20, 4 }
  0x46   : > { %v1081_v3 = vpop.eup %1080  ;;  %613 = vmatpush.bf16.msra.mxu1 %v955_v18  ;;  %646 = vmatpush.bf16.msra.mxu2 %v957_v19  ;;  %v1076_v32 = vld [vmem:[%s1748_s2] ss:$0 sm:$0xff]  ;;  %1749 = sst [smem:[#allocation22_spill]] %s1613_s26  ;;  %s711_s28 = scalar_lea.hbm %s1721_s11, %s948_s27 }
  0x47   : > { %v516_v4 = vmul.f32 32.0, %v1081_v3  ;;  %vm520_vm1 = vweird.f32 %v1081_v3  ;;  %1750 = sst [smem:[#allocation23_spill]] %s1615_s15  ;;  %s1729_s7 = scalar_lea.vmem [#allocation14], %s1588_s21 }
  0x48   : > { %s1630_s20 = sshll.u32 %s1729_s7, 4  ;;  %s1632_s30 = sshll.u32 %s711_s28, 4  ;;  %s714_s20 = int_to_ptr.vmem [resolvable:$true] %s1630_s20  ;;  %s716_s30 = int_to_ptr.hbm [resolvable:$true] %s1632_s30 }
  0x49   : > { %v517_v5 = vsub.f32 1.0, %v516_v4  ;;  %s1634_s0 = scalar_lea.sflag [#allocation13], %s664_s14  ;;  %s1248_s27 = sshra.s32 %s701_s23, 4  ;;  %s1249_s27 = int_to_ptr.hbm [resolvable:$true] %s1248_s27 }
  0x4a   : > { %s1250_s25 = scalar_lea.hbm %s1249_s27, 4  ;;  %s1254_s26 = scalar_lea.hbm %s1720_s10, 8 }
  0x4b   : > { %v518_v6 = vmul.f32 %v1081_v3, %v517_v5  ;;  %p1251_p1 = scmp.ne.s32.totalorder %s1249_s27, %s1250_s25  ;;  %p1255_p9 = scmp.lt.s32.totalorder %s1249_s27, %s1720_s10 }
  0x4c   : > { %p1256_p10 = scmp.lt.s32.totalorder %s1254_s26, %s1250_s25 }
  0x4d   : > { %v519_v7 = vadd.f32 %v1081_v3, %v518_v6  ;;  %p1252_p3 = pnand %p1251_p1, %p1541_p0 }
  0x4e   : > { %p1257_p12 = por %p1256_p10, %p1255_p9 }
  0x4f   : > { %v521_v8 = vsel %vm520_vm1, %v1081_v3, %v519_v7  ;;  %p1253_p8 = pneg %p1252_p3 }
  0x51   : > { %p1258_p13 = pnand %p1257_p12, %p1253_p8 }
  0xb4   : > { %v514_v9 = vpop.xlane.xlu0 %513 }
  0xb5   : > { %v522_v10 = vmul.f32 %v521_v8, %v514_v9 }
  0xb7   : > { %v523_v11 = vsub.f32 %v508_v0, %v522_v10 }
  0xb9   : > { %v524_v12 = vmul.f32 %v523_v11, %v523_v11 }
  0xbb   : > { %v525_v13 = vsel %vm511_vm0, %v524_v12, 0.0 }
  0xbc   : > { %526 = vadd.xlane.f32.xlu0 %v525_v13 }
 0x12f   : > { %v527_v20 = vpop.xlane.xlu0 %526 }
 0x130   : > { %v528_v21 = vmul.f32 %v527_v20, %v521_v8 }
 0x132   : > { %v529_v22 = vadd.f32 1e-05, %v528_v21 }
 0x134   : > { %1082 = vrsqrt.f32 %v529_v22  ;;  %vm536_vm3 = vweird.f32 %v529_v22 }
 0x13a   : > { %v1083_v23 = vpop.eup %1082 }
 0x13b   : > { %v531_v24 = vmul.f32 %v1083_v23, %v529_v22  ;;  %vm537_vm2 = vweird.f32 %v1083_v23 }
 0x13c   : > { %vm538_vm4 = vmor %vm536_vm3, %vm537_vm2 }
 0x13d   : > { %v532_v25 = vmul.f32 %v1083_v23, %v531_v24 }
 0x13f   : > { %v533_v26 = vmul.f32 0.5, %v532_v25 }
 0x141   : > { %v534_v27 = vsub.f32 1.5, %v533_v26 }
 0x143   : > { %v535_v28 = vmul.f32 %v1083_v23, %v534_v27 }
 0x145   : > { %v539_v30 = vsel %vm538_vm4, %v1083_v23, %v535_v28 }
 0x146   : > { %v540_v31 = vmul.f32 %v539_v30, %v523_v11 }
 0x148   : > { %v544_v33 = vmul.f32 %v1075_v29, %v540_v31 }
 0x14a   : > { %v548_v34 = vadd.f32 %v1076_v32, %v544_v33 }
 0x14c   : > { %v549_v35 = vpack.c.bf16 %v548_v34, %v548_v34 }
 0x14e   : > { %926 = vmatmul.msk.bf16.vlgmr.msra.gmra.mxu0 %vm511_vm0, %v549_v35  ;;  %935 = vmatmul.msk.bf16.vlgmr.msra.gmra.mxu1 %vm511_vm0, %v549_v35 }
 0x14f   : > { %944 = vmatmul.msk.bf16.vlgmr.msra.gmra.mxu2 %vm511_vm0, %v549_v35 }
 0x1cb   : > { %v582_v38 = vpop.f32.mrf.mxu0  ;;  %v615_v39 = vpop.f32.mrf.mxu1 }
 0x1cc   : > { %v583_v40 = vadd.f32 %v1077_v36, %v582_v38  ;;  %v616_v41 = vadd.f32 %v1078_v37, %v615_v39 }
 0x1ce   : > { %v652_v42 = vpack.c.bf16 %v583_v40, %v583_v40  ;;  %v655_v43 = vpack.c.bf16 %v616_v41, %v616_v41 }
 0x1d0   : > { %656 = vst.msk [vmem:[%s499_s29] sm:$0xf] %vm653_vm5, %v655_v43 }
 0x1d1   : > { %1261 = shalt.err (!%p1258_p13)
}
 0x1d2   : > { %s1751_s14 = sld [smem:[#allocation23_spill]]  ;;  %s1752_s28 = scalar_lea.vmem [#allocation11], %s1588_s21  ;;  %v648_v45 = vpop.f32.mrf.mxu2 }
 0x1d3   : > { %978 = dma.vmem_to_hbm [thread:$0]  (%p1541_p0), %s699_s5, 64, %s701_s23, %s1634_s0   ;;  %654 = vst.msk [vmem:[%s1752_s28] sm:$0xf] %vm653_vm5, %v652_v42 }
 0x1d4   : > { %s660_s15 = scalar_lea.sflag [#allocation4], %s1563_s16  ;;  %s1282_s29 = scalar_lea.hbm %s1719_s9, 8 }
 0x1d8   : > { %s1753_s27 = int_to_ptr.hbm [resolvable:$true] %s1751_s14 }
 0x1d9   : > { %s1276_s26 = sshra.s32 %s1753_s27, 4  ;;  %s1277_s26 = int_to_ptr.hbm [resolvable:$true] %s1276_s26 }
 0x1da   : > { %s1278_s25 = scalar_lea.hbm %s1277_s26, 4  ;;  %p1283_p11 = scmp.lt.s32.totalorder %s1277_s26, %s1719_s9 }
 0x1db   : > { %p1279_p2 = scmp.ne.s32.totalorder %s1277_s26, %s1278_s25  ;;  %p1284_p1 = scmp.lt.s32.totalorder %s1282_s29, %s1278_s25 }
 0x1dd   : > { %p1280_p5 = pnand %p1279_p2, %p1541_p0  ;;  %p1285_p3 = por %p1284_p1, %p1283_p11 }
 0x1df   : > { %p1281_p7 = pneg %p1280_p5 }
 0x1e1   : > { %p1286_p8 = pnand %p1285_p3, %p1281_p7 }
 0x1e3   : > { %1289 = shalt.err (!%p1286_p8)
}
 0x1e4   : > { %s1754_s16 = smov %s1753_s27  ;;  %s1755_s5 = sld [smem:[#allocation22_spill]]  ;;  %v649_v46 = vadd.f32 %v1079_v44, %v648_v45  ;;  %v584_v47 = vpop.f32.mrf.mxu0  ;;  %v617_v48 = vpop.f32.mrf.mxu1 }
 0x1e5   : > { %s1757_s2 = scalar_lea.vmem [#allocation14], %s1588_s21  ;;  %s1304_s7 = sshra.s32 %s716_s30, 4  ;;  %s1305_s7 = int_to_ptr.hbm [resolvable:$true] %s1304_s7 }
 0x1e6   : > { %v657_v49 = vpack.c.bf16 %v649_v46, %v649_v46  ;;  %s1306_s28 = scalar_lea.hbm %s1305_s7, 4  ;;  %p1311_p13 = scmp.lt.s32.totalorder %s1305_s7, %s1721_s11 }
 0x1e7   : > { %p1307_p9 = scmp.ne.s32.totalorder %s1305_s7, %s1306_s28 }
 0x1e8   : > { %658 = vst.msk [vmem:[%s1757_s2] sm:$0xf] %vm653_vm5, %v657_v49 }
 0x1e9   : > { %p1308_p10 = pnand %p1307_p9, %p1541_p0 }
 0x1ea   : > { %s1756_s23 = int_to_ptr.vmem [resolvable:$true] %s1755_s5 }
 0x1eb   : > { %977 = dma.vmem_to_hbm [thread:$0]  (%p1541_p0), %s1756_s23, 64, %s1754_s16, %s660_s15  }
 0x1ec   : > { %p1309_p12 = pneg %p1308_p10  ;;  %s1310_s15 = scalar_lea.hbm %s1721_s11, 8 }
 0x1ed   : > { %p1312_p2 = scmp.lt.s32.totalorder %s1310_s15, %s1306_s28 }
 0x1ef   : > { %p1313_p5 = por %p1312_p2, %p1311_p13 }
 0x1f1   : > { %p1314_p7 = pnand %p1313_p5, %p1309_p12 }
 0x1f3   : > { %1317 = shalt.err (!%p1314_p7)
}
 0x1f4   : > { %979 = dma.vmem_to_hbm [thread:$0]  (%p1541_p0), %s714_s20, 64, %s716_s30, %s1634_s0   ;;  %v650_v50 = vpop.f32.mrf.mxu2 }
 0x1f5 PF: > { %s727_s21 = sand.u32 1, %s1364_s17   ;;  %p1001_p11 = pnand %p906_p4, %p1550_p6 }
 0x1f6   : > { %s728_s13 = scalar_lea.sflag [#allocation4], %s727_s21 }
 0x1f7   : > { %p1002_p1 = pneg %p1001_p11 }
 0x1f9   : > { %1355 = dma.done.wait (%p1002_p1), %s728_s13, 64  }
 0x1fa   : > { %1357 = vsyncadd (%p1002_p1), %s728_s13, 4294967232  ;;  %s1758_s24 = sadd.s32 4294967294, %s1384_s22  }
 0x1fb   : > { %s737_s29 = sand.u32 1, %s1758_s24  }
 0x1fc   : > { %s738_s16 = scalar_lea.sflag [#allocation13], %s737_s29 }
 0x1fd   : > { %1359 = dma.done.wait (%p1002_p1), %s738_s16, 128  }
 0x1fe   : > { %1361 = vsyncadd (%p1002_p1), %s738_s16, 4294967168  ;;  %s33_s22 = sadd.s32 1, %s1384_s22   ;;  %s1759_s20 = sld [smem:[#allocation20_spill]] }
 0x1ff   : > { %p30_p0 = scmp.ge.s32.totalorder %s33_s22, 4   ;;  %s1760_s21 = sld [smem:[#allocation21_spill]] }
 0x200   : > { %s1761_s17 = smov %s1368_s18  ;;  %s1762_s18 = smov %s1372_s19 }
 0x201   : > { %s1763_s19 = smov %s1548_s3  ;;  %32 = sbr.rel (!%p30_p0) target bundleno = 17 (0x11), region = 149 }
 0x206   :  { %754 = vsyncpa [#allocation3], 1 }
 0x207   :  { %756 = vsyncpa [#allocation3 + $0x1], 1 }
 0x208   :  { %757 = vsyncpa [#allocation6], 1 }
 0x209   :  { %758 = vsyncpa [#allocation9], 1 }
 0x20a   :  { %759 = vsyncpa [#allocation4], 1 }
 0x20b   :  { %761 = vsyncpa [#allocation4 + $0x1], 1 }
 0x20c   :  { %762 = vsyncpa [#allocation13], 1 }
 0x20d   :  { %764 = vsyncpa [#allocation13 + $0x1], 1 }

</bundles_post_ra>
